<compile_context>
chip_gen: v5e
topology: v5e:2x2
jax: 0.10.0
libtpu: 0.0.40
codegen_flags: <defaults>
</compile_context>

<pallas_src>
import numpy as np
import jax
import jax.numpy as jnp
from jax.experimental import pallas as pl
from jax.experimental.pallas import tpu as pltpu

NEG_SLOPE = 0.01    # F.leaky_relu default negative slope
NEG_FILL = -1e30    # fill for padded edge slots: exp underflows to exactly 0


def _round_up(x, m):
    return ((x + m - 1) // m) * m


# ---------------------------------------------------------------------------
# Kernel 1: multi-head GAT edge attention + edge_softmax, one destination tile
# ---------------------------------------------------------------------------
def gat_edge_softmax_kernel(s_ref, adst_ref, out_ref):
    """Per destination tile of TN=128 destinations (lanes).

    s_ref:    (H, DEG_pad, TN)  a_src[src(e)] + a_edge[e]; NEG_FILL at padded slots
    adst_ref: (H, 1, TN)        a_dst per destination
    out_ref:  (DEG_pad, TN)     mean-over-heads edge-softmax attention
    """
    num_heads = s_ref.shape[0]
    acc = jnp.zeros(out_ref.shape, jnp.float32)
    for h in range(num_heads):                            # static unroll (H = 3)
        s = s_ref[h] + adst_ref[h]                        # (DEG_pad, TN)
        s = jnp.where(s > 0, s, NEG_SLOPE * s)            # leaky_relu
        m = jnp.max(s, axis=0, keepdims=True)             # per-destination max (1, TN)
        e = jnp.exp(s - m)                                # padded slots -> exp(-huge) = 0
        denom = jnp.sum(e, axis=0, keepdims=True)         # per-destination sum (1, TN)
        # one reciprocal per (head, destination), broadcast to edges (EUP slot)
        acc = acc + e * pl.reciprocal(denom, approx=True)
    out_ref[...] = (acc * (1.0 / num_heads)).astype(out_ref.dtype)


def gat_edge_softmax(dense_s, dense_adst, *, tn=128):
    """dense_s: (H, DEG_pad, N_dst_pad) f32; dense_adst: (H, 1, N_dst_pad) f32."""
    num_heads, deg_pad, n_pad = dense_s.shape
    assert n_pad % tn == 0 and deg_pad % 8 == 0
    # NOTE: per-block VMEM is H*DEG_pad*TN*4 B (KiB scale for sampled-fanout
    # graphs), well under the scoped-VMEM limit of v5e/v6e/v7x.
    # TODO(synk): for unbounded in-degree, add a second (arbitrary) grid axis over
    # DEG tiles with an online-softmax carry instead of a single DEG_pad block.
    cost = pl.CostEstimate(
        flops=int(8 * num_heads * deg_pad * n_pad),
        transcendentals=int(num_heads * deg_pad * n_pad + num_heads * n_pad),
        bytes_accessed=int(4 * (num_heads * deg_pad * n_pad
                                + num_heads * n_pad + deg_pad * n_pad)),
    )
    return pl.pallas_call(
        gat_edge_softmax_kernel,
        out_shape=jax.ShapeDtypeStruct((deg_pad, n_pad), jnp.float32),
        grid=(n_pad // tn,),
        in_specs=[
            pl.BlockSpec((num_heads, deg_pad, tn), lambda j: (0, 0, j)),
            pl.BlockSpec((num_heads, 1, tn), lambda j: (0, 0, j)),
        ],
        out_specs=pl.BlockSpec((deg_pad, tn), lambda j: (0, j)),
        compiler_params=pltpu.CompilerParams(dimension_semantics=("parallel",)),
        cost_estimate=cost,
    )(dense_s, dense_adst)


# ---------------------------------------------------------------------------
# Kernel 2: z = L2normalize(relu(x @ W^T + b)) over destination-node row tiles
# ---------------------------------------------------------------------------
def proj_relu_l2norm_kernel(x_ref, w_ref, b_ref, o_ref):
    # x: (TM, 2D), w: (2D, O), b: (1, O), o: (TM, O)
    z = jnp.dot(x_ref[...], w_ref[...], preferred_element_type=jnp.float32)
    z = z + b_ref[...]
    z = jnp.maximum(z, 0.0)                               # relu
    norm = jnp.sqrt(jnp.sum(z * z, axis=1, keepdims=True))
    norm = jnp.where(norm == 0.0, 1.0, norm)              # torch.where(z_norm==0, 1, .)
    o_ref[...] = (z / norm).astype(o_ref.dtype)


def proj_relu_l2norm(x, w_t, b, *, tm=128):
    n_rows, k = x.shape
    out_dim = w_t.shape[1]
    n_pad = _round_up(n_rows, tm)
    x_pad = jnp.zeros((n_pad, k), jnp.float32).at[:n_rows].set(x)
    out = pl.pallas_call(
        proj_relu_l2norm_kernel,
        out_shape=jax.ShapeDtypeStruct((n_pad, out_dim), jnp.float32),
        grid=(n_pad // tm,),
        in_specs=[
            pl.BlockSpec((tm, k), lambda i: (i, 0)),
            pl.BlockSpec((k, out_dim), lambda i: (0, 0)),
            pl.BlockSpec((1, out_dim), lambda i: (0, 0)),
        ],
        out_specs=pl.BlockSpec((tm, out_dim), lambda i: (i, 0)),
        compiler_params=pltpu.CompilerParams(dimension_semantics=("parallel",)),
    )(x_pad, w_t, b[None, :])
    return out[:n_rows]


# ---------------------------------------------------------------------------
# MultiSAGEConv forward (Pallas kernels + JAX glue)
# ---------------------------------------------------------------------------
def multisage_forward(params, h_src, h_dst, context_node, src_idx, dst_idx,
                      attn_index=None, *, tn=128, tm=128):
    """Returns (edge attention (E,1), dst-node output z (N_dst, output_dims))."""
    # TODO(synk): nn.Dropout(0.5) is treated as identity (eval-mode forward).
    # TODO(synk): attn_index masking path (attention[attn_index]=0 and the
    #             E - sum(attn_index) denominator) is not implemented.
    del attn_index
    d = h_src.shape[1]
    num_edges = context_node.shape[0]
    n_dst = h_dst.shape[0]
    num_heads = params["attn_w"].shape[0]

    # ---- node / edge transforms (dense XLA work) ----
    z_src = jax.nn.relu(h_src @ params["Qw"].T + params["Qb"])     # (N_src, D)
    z_c = jax.nn.relu(context_node)                                # (E, D)
    assert z_src.shape[1] == h_dst.shape[1] == z_c.shape[1] == d

    # ---- per-node partial attention scores (no (E, 3D) concat, no (E,3D)x(3D,1)) ----
    w = params["attn_w"].astype(jnp.float32)                       # (H, 3D)
    w_src, w_dst, w_edge = w[:, :d], w[:, d:2 * d], w[:, 2 * d:]
    a_src = z_src @ w_src.T                                        # (N_src, H)
    a_dst = h_dst @ w_dst.T                                        # (N_dst, H)
    a_edge = z_c @ w_edge.T                                        # (E, H)
    s_partial = a_src[src_idx] + a_edge                            # (E, H) scalar gathers

    # ---- group edges by destination: slot = rank of edge within its dst segment ----
    ones = jnp.ones((num_edges,), jnp.int32)
    deg = jax.ops.segment_sum(ones, dst_idx, num_segments=n_dst)   # in-degree per dst
    start = jnp.cumsum(deg) - deg
    order = jnp.argsort(dst_idx)
    slot_sorted = jnp.arange(num_edges, dtype=jnp.int32) - start[dst_idx[order]]
    slot = jnp.zeros((num_edges,), jnp.int32).at[order].set(slot_sorted)

    deg_pad = _round_up(max(int(jnp.max(deg)), 1), 8)
    n_pad = _round_up(n_dst, tn)

    # lane-dense (heads, slot, destination) layout: each destination's softmax
    # lives entirely inside one 128-lane column of one destination tile.
    dense_s = jnp.full((num_heads, deg_pad, n_pad), NEG_FILL, jnp.float32)
    dense_s = dense_s.at[:, slot, dst_idx].set(s_partial.T.astype(jnp.float32))
    dense_adst = jnp.zeros((num_heads, 1, n_pad), jnp.float32)
    dense_adst = dense_adst.at[:, 0, :n_dst].set(a_dst.T.astype(jnp.float32))

    attn_dense = gat_edge_softmax(dense_s, dense_adst, tn=tn)      # (DEG_pad, N_pad)
    a_mean = attn_dense[slot, dst_idx]                             # (E,) edge order

    # ---- attention-weighted aggregation (data-dependent scatter-add: XLA glue) ----
    z_src_c = z_src[src_idx] * z_c                                 # (E, D)
    z_t_c = h_dst[dst_idx] * z_c                                   # (E, D)
    neighbors = z_src_c * a_mean[:, None]
    targets = z_t_c * a_mean[:, None]
    ns = jax.ops.segment_sum(neighbors, dst_idx, num_segments=n_dst)
    ts = jax.ops.segment_sum(targets, dst_idx, num_segments=n_dst)
    neighbor = ns / num_edges
    target = ts / num_edges

    # ---- output projection + relu + row L2 norm (Pallas kernel 2) ----
    x_cat = jnp.concatenate([neighbor, target], axis=1).astype(jnp.float32)
    z = proj_relu_l2norm(x_cat,
                         params["Ww"].T.astype(jnp.float32),
                         params["Wb"].astype(jnp.float32),
                         tm=tm)
    return a_mean[:, None], z


# ---------------------------------------------------------------------------
# Pure-JAX reference (mirrors the PyTorch module literally)
# ---------------------------------------------------------------------------
def reference_forward(params, h_src, h_dst, context_node, src_idx, dst_idx):
    num_edges = context_node.shape[0]
    n_dst = h_dst.shape[0]
    z_src = jax.nn.relu(h_src @ params["Qw"].T + params["Qb"])
    z_c = jax.nn.relu(context_node)
    x = jnp.concatenate([z_src[src_idx], h_dst[dst_idx], z_c], axis=1)   # (E, 3D)
    head_outs = []
    for h in range(params["attn_w"].shape[0]):
        s = x @ params["attn_w"][h]                                      # (E,)
        s = jnp.where(s > 0, s, NEG_SLOPE * s)
        m = jax.ops.segment_max(s, dst_idx, num_segments=n_dst)
        e = jnp.exp(s - m[dst_idx])
        den = jax.ops.segment_sum(e, dst_idx, num_segments=n_dst)
        head_outs.append(e / den[dst_idx])
    a_mean = jnp.mean(jnp.stack(head_outs, axis=0), axis=0)              # (E,)
    z_src_c = z_src[src_idx] * z_c
    z_t_c = h_dst[dst_idx] * z_c
    ns = jax.ops.segment_sum(z_src_c * a_mean[:, None], dst_idx, num_segments=n_dst)
    ts = jax.ops.segment_sum(z_t_c * a_mean[:, None], dst_idx, num_segments=n_dst)
    neighbor = ns / num_edges
    target = ts / num_edges
    z = jax.nn.relu(jnp.concatenate([neighbor, target], axis=1) @ params["Ww"].T
                    + params["Wb"])
    z_norm = jnp.sqrt(jnp.sum(z * z, axis=1, keepdims=True))
    z_norm = jnp.where(z_norm == 0.0, 1.0, z_norm)
    return a_mean[:, None], z / z_norm


if __name__ == "__main__":
    key = jax.random.PRNGKey(0)
    D = 128       # input_dims == hidden_dims (required by GATLayer's 3*input_dims concat)
    O = 128       # output_dims
    H = 3         # gat_num_heads
    N_SRC, N_DST, E = 64, 32, 256

    keys = jax.random.split(key, 8)
    h_src = jax.random.normal(keys[0], (N_SRC, D), dtype=jnp.float32)
    h_dst = jax.random.normal(keys[1], (N_DST, D), dtype=jnp.float32)
    context = jax.random.normal(keys[2], (E, D), dtype=jnp.float32)
    src_idx = jax.random.randint(keys[3], (E,), 0, N_SRC, dtype=jnp.int32)
    # guarantee every destination node has at least one incoming edge
    dst_idx = jnp.concatenate(
        [jnp.arange(N_DST, dtype=jnp.int32),
         jax.random.randint(keys[4], (E - N_DST,), 0, N_DST, dtype=jnp.int32)])

    # parameters (xavier-style init, bias = 0, like _reset_parameters)
    gain = float(np.sqrt(2.0))
    attn_std = gain * float(np.sqrt(2.0 / (3 * D + 1)))
    attn_w = attn_std * jax.random.normal(keys[5], (H, 3 * D), dtype=jnp.float32)
    q_lim = gain * float(np.sqrt(6.0 / (D + D)))
    Qw = jax.random.uniform(keys[6], (D, D), jnp.float32, -q_lim, q_lim)
    Qb = jnp.zeros((D,), jnp.float32)
    w_lim = gain * float(np.sqrt(6.0 / (2 * D + O)))
    Ww = jax.random.uniform(keys[7], (O, 2 * D), jnp.float32, -w_lim, w_lim)
    Wb = jnp.zeros((O,), jnp.float32)
    params = dict(attn_w=attn_w, Qw=Qw, Qb=Qb, Ww=Ww, Wb=Wb)

    attn_k, z_k = multisage_forward(params, h_src, h_dst, context, src_idx, dst_idx)
    z_k = jax.block_until_ready(z_k)

    attn_r, z_r = reference_forward(params, h_src, h_dst, context, src_idx, dst_idx)

    # tolerances account for pl.reciprocal(approx=True) in the softmax denominator
    np.testing.assert_allclose(np.asarray(attn_k), np.asarray(attn_r),
                               rtol=5e-3, atol=5e-4)
    np.testing.assert_allclose(np.asarray(z_k), np.asarray(z_r),
                               rtol=5e-3, atol=5e-4)

    print("KERNEL_OK")
</pallas_src>

<mosaic_0001>
module attributes {stable_mosaic.version = 11 : i64} {
  func.func @gat_edge_softmax_kernel(%arg0: i32, %arg1: memref<3x16x128xf32, #tpu.memory_space<vmem>>, %arg2: memref<3x1x128xf32, #tpu.memory_space<vmem>>, %arg3: memref<16x128xf32, #tpu.memory_space<vmem>>) attributes {dimension_semantics = [#tpu.dimension_semantics<parallel>], iteration_bounds = array<i64: 1>, scalar_prefetch = 0 : i64, scratch_operands = 0 : i64, tpu.core_type = #tpu.core_type<tc>, window_params = [{transform_indices = @transform_0, window_bounds = array<i64: 3, 16, 128>}, {transform_indices = @transform_1, window_bounds = array<i64: 3, 1, 128>}, {transform_indices = @transform_2, window_bounds = array<i64: 16, 128>}]} {
    %cst = arith.constant 0.000000e+00 : f32
    %0 = vector.broadcast %cst : f32 to vector<16x128xf32>
    %c0 = arith.constant 0 : index
    %c0_0 = arith.constant 0 : index
    %c0_1 = arith.constant 0 : index
    %1 = vector.load %arg1[%c0, %c0_0, %c0_1] : memref<3x16x128xf32, #tpu.memory_space<vmem>>, vector<1x16x128xf32>
    %2 = vector.shape_cast %1 : vector<1x16x128xf32> to vector<16x128xf32>
    %c0_2 = arith.constant 0 : index
    %c0_3 = arith.constant 0 : index
    %c0_4 = arith.constant 0 : index
    %3 = vector.load %arg2[%c0_2, %c0_3, %c0_4] : memref<3x1x128xf32, #tpu.memory_space<vmem>>, vector<1x1x128xf32>
    %4 = vector.shape_cast %3 : vector<1x1x128xf32> to vector<1x128xf32>
    %5 = vector.broadcast %4 : vector<1x128xf32> to vector<16x128xf32>
    %6 = arith.addf %2, %5 : vector<16x128xf32>
    %cst_5 = arith.constant 0.000000e+00 : f32
    %7 = vector.broadcast %cst_5 : f32 to vector<16x128xf32>
    %8 = arith.cmpf ogt, %6, %7 : vector<16x128xf32>
    %cst_6 = arith.constant 0.00999999977 : f32
    %9 = vector.broadcast %cst_6 : f32 to vector<16x128xf32>
    %10 = arith.mulf %9, %6 : vector<16x128xf32>
    %11 = arith.select %8, %6, %10 : vector<16x128xi1>, vector<16x128xf32>
    %cst_7 = arith.constant dense<0xFF800000> : vector<128xf32>
    %12 = vector.multi_reduction <maximumf>, %11, %cst_7 [0] : vector<16x128xf32> to vector<128xf32>
    %13 = vector.shape_cast %12 : vector<128xf32> to vector<1x128xf32>
    %14 = vector.broadcast %13 : vector<1x128xf32> to vector<16x128xf32>
    %15 = arith.subf %11, %14 : vector<16x128xf32>
    %16 = math.exp %15 : vector<16x128xf32>
    %cst_8 = arith.constant dense<0.000000e+00> : vector<128xf32>
    %17 = vector.multi_reduction <add>, %16, %cst_8 [0] : vector<16x128xf32> to vector<128xf32>
    %18 = vector.shape_cast %17 : vector<128xf32> to vector<1x128xf32>
    %19 = tpu.reciprocal %18 {approx = true} : vector<1x128xf32> -> vector<1x128xf32>
    %20 = vector.broadcast %19 : vector<1x128xf32> to vector<16x128xf32>
    %21 = arith.mulf %16, %20 : vector<16x128xf32>
    %22 = arith.addf %0, %21 : vector<16x128xf32>
    %c1 = arith.constant 1 : index
    %c0_9 = arith.constant 0 : index
    %c0_10 = arith.constant 0 : index
    %23 = vector.load %arg1[%c1, %c0_9, %c0_10] : memref<3x16x128xf32, #tpu.memory_space<vmem>>, vector<1x16x128xf32>
    %24 = vector.shape_cast %23 : vector<1x16x128xf32> to vector<16x128xf32>
    %c1_11 = arith.constant 1 : index
    %c0_12 = arith.constant 0 : index
    %c0_13 = arith.constant 0 : index
    %25 = vector.load %arg2[%c1_11, %c0_12, %c0_13] : memref<3x1x128xf32, #tpu.memory_space<vmem>>, vector<1x1x128xf32>
    %26 = vector.shape_cast %25 : vector<1x1x128xf32> to vector<1x128xf32>
    %27 = vector.broadcast %26 : vector<1x128xf32> to vector<16x128xf32>
    %28 = arith.addf %24, %27 : vector<16x128xf32>
    %cst_14 = arith.constant 0.000000e+00 : f32
    %29 = vector.broadcast %cst_14 : f32 to vector<16x128xf32>
    %30 = arith.cmpf ogt, %28, %29 : vector<16x128xf32>
    %cst_15 = arith.constant 0.00999999977 : f32
    %31 = vector.broadcast %cst_15 : f32 to vector<16x128xf32>
    %32 = arith.mulf %31, %28 : vector<16x128xf32>
    %33 = arith.select %30, %28, %32 : vector<16x128xi1>, vector<16x128xf32>
    %cst_16 = arith.constant dense<0xFF800000> : vector<128xf32>
    %34 = vector.multi_reduction <maximumf>, %33, %cst_16 [0] : vector<16x128xf32> to vector<128xf32>
    %35 = vector.shape_cast %34 : vector<128xf32> to vector<1x128xf32>
    %36 = vector.broadcast %35 : vector<1x128xf32> to vector<16x128xf32>
    %37 = arith.subf %33, %36 : vector<16x128xf32>
    %38 = math.exp %37 : vector<16x128xf32>
    %cst_17 = arith.constant dense<0.000000e+00> : vector<128xf32>
    %39 = vector.multi_reduction <add>, %38, %cst_17 [0] : vector<16x128xf32> to vector<128xf32>
    %40 = vector.shape_cast %39 : vector<128xf32> to vector<1x128xf32>
    %41 = tpu.reciprocal %40 {approx = true} : vector<1x128xf32> -> vector<1x128xf32>
    %42 = vector.broadcast %41 : vector<1x128xf32> to vector<16x128xf32>
    %43 = arith.mulf %38, %42 : vector<16x128xf32>
    %44 = arith.addf %22, %43 : vector<16x128xf32>
    %c2 = arith.constant 2 : index
    %c0_18 = arith.constant 0 : index
    %c0_19 = arith.constant 0 : index
    %45 = vector.load %arg1[%c2, %c0_18, %c0_19] : memref<3x16x128xf32, #tpu.memory_space<vmem>>, vector<1x16x128xf32>
    %46 = vector.shape_cast %45 : vector<1x16x128xf32> to vector<16x128xf32>
    %c2_20 = arith.constant 2 : index
    %c0_21 = arith.constant 0 : index
    %c0_22 = arith.constant 0 : index
    %47 = vector.load %arg2[%c2_20, %c0_21, %c0_22] : memref<3x1x128xf32, #tpu.memory_space<vmem>>, vector<1x1x128xf32>
    %48 = vector.shape_cast %47 : vector<1x1x128xf32> to vector<1x128xf32>
    %49 = vector.broadcast %48 : vector<1x128xf32> to vector<16x128xf32>
    %50 = arith.addf %46, %49 : vector<16x128xf32>
    %cst_23 = arith.constant 0.000000e+00 : f32
    %51 = vector.broadcast %cst_23 : f32 to vector<16x128xf32>
    %52 = arith.cmpf ogt, %50, %51 : vector<16x128xf32>
    %cst_24 = arith.constant 0.00999999977 : f32
    %53 = vector.broadcast %cst_24 : f32 to vector<16x128xf32>
    %54 = arith.mulf %53, %50 : vector<16x128xf32>
    %55 = arith.select %52, %50, %54 : vector<16x128xi1>, vector<16x128xf32>
    %cst_25 = arith.constant dense<0xFF800000> : vector<128xf32>
    %56 = vector.multi_reduction <maximumf>, %55, %cst_25 [0] : vector<16x128xf32> to vector<128xf32>
    %57 = vector.shape_cast %56 : vector<128xf32> to vector<1x128xf32>
    %58 = vector.broadcast %57 : vector<1x128xf32> to vector<16x128xf32>
    %59 = arith.subf %55, %58 : vector<16x128xf32>
    %60 = math.exp %59 : vector<16x128xf32>
    %cst_26 = arith.constant dense<0.000000e+00> : vector<128xf32>
    %61 = vector.multi_reduction <add>, %60, %cst_26 [0] : vector<16x128xf32> to vector<128xf32>
    %62 = vector.shape_cast %61 : vector<128xf32> to vector<1x128xf32>
    %63 = tpu.reciprocal %62 {approx = true} : vector<1x128xf32> -> vector<1x128xf32>
    %64 = vector.broadcast %63 : vector<1x128xf32> to vector<16x128xf32>
    %65 = arith.mulf %60, %64 : vector<16x128xf32>
    %66 = arith.addf %44, %65 : vector<16x128xf32>
    %cst_27 = arith.constant 0.333333343 : f32
    %67 = vector.broadcast %cst_27 : f32 to vector<16x128xf32>
    %68 = arith.mulf %66, %67 : vector<16x128xf32>
    %c0_28 = arith.constant 0 : index
    %c0_29 = arith.constant 0 : index
    %69 = vector.load %arg3[%c0_28, %c0_29] : memref<16x128xf32, #tpu.memory_space<vmem>>, vector<16x128xf32>
    tpu.vector_store %arg3[%c0_28, %c0_29], %68 {strides = array<i32>} : memref<16x128xf32, #tpu.memory_space<vmem>>, vector<16x128xf32>,
    return
  }
  func.func @transform_0(%arg0: i32) -> (i32, i32, i32) {
    %c0_i32 = arith.constant 0 : i32
    %c0_i32_0 = arith.constant 0 : i32
    %c0_i32_1 = arith.constant 0 : i32
    return %c0_i32, %c0_i32_0, %arg0 : i32, i32, i32
  }
  func.func @transform_1(%arg0: i32) -> (i32, i32, i32) {
    %c0_i32 = arith.constant 0 : i32
    %c0_i32_0 = arith.constant 0 : i32
    %c0_i32_1 = arith.constant 0 : i32
    return %c0_i32, %c0_i32_0, %arg0 : i32, i32, i32
  }
  func.func @transform_2(%arg0: i32) -> (i32, i32) {
    %c0_i32 = arith.constant 0 : i32
    %c0_i32_0 = arith.constant 0 : i32
    return %c0_i32, %arg0 : i32, i32
  }
}

</mosaic_0001>

<bundles_post_ra>
// kernel: tpu_custom_call.1
= control target key start
LH: loop header
LB: loop body
LE: loop exit
PB: predicated region body
PF: predicated region fallthrough
CT: control target
= control target key end

     0   :  { %7 = vsyncpa [#allocation3], 0  ;;  %s332_s0 = inlined_call_operand.hbm [shape: f32[3,16,128], index: 0, kind: input, shape index: {}]   ;;  %s333_s1 = inlined_call_operand.hbm [shape: f32[3,1,128], index: 1, kind: input, shape index: {}]   ;;  %s334_s2 = inlined_call_operand.hbm [shape: f32[16,128], index: 2, kind: output, shape index: {}]  }
   0x1   :  { %8 = vsyncpa [#allocation6], 0 }
   0x2   :  { %9 = vsyncpa [#allocation4], 0  ;;  %s14_s11 = sshll.u32 %s332_s0, 4  ;;  %s295_s12 = smov [#allocation2]   ;;  %s15_s11 = int_to_ptr.hbm [resolvable:$true] %s14_s11 }
   0x3   :  { %s16_s13 = sshll.u32 %s295_s12, 4  ;;  %s27_s16 = sshll.u32 %s333_s1, 4  ;;  %s17_s13 = int_to_ptr.vmem [resolvable:$true] %s16_s13  ;;  %s28_s16 = int_to_ptr.hbm [resolvable:$true] %s27_s16 }
   0x4   :  { %s296_s17 = smov 128   ;;  %s297_s18 = smov 8  }
   0x5   :  { %22 = dma.hbm_to_vmem [thread:$0]  %s15_s11, 768, %s17_s13, [#allocation3], %s296_s17, %s296_s17, %s297_s18  }
   0x6   :  { %s298_s19 = smov [#allocation5]   ;;  %s299_s21 = smov 16  }
   0x7   :  { %s29_s20 = sshll.u32 %s298_s19, 4  ;;  %s300_s0 = smov 1   ;;  %s30_s20 = int_to_ptr.vmem [resolvable:$true] %s29_s20 }
   0x8   :  { %35 = dma.hbm_to_vmem [thread:$0]  %s28_s16, 48, %s30_s20, [#allocation6], %s299_s21, %s299_s21, %s300_s0  }
   0x9   :  { %289 = dma.done.wait [#allocation3], 768  }
   0xa   :  { %290 = vsyncadd [#allocation3], 4294966528 }
   0xb   :  { %291 = dma.done.wait [#allocation6], 48  }
   0xc   :  { %292 = vsyncadd [#allocation6], 4294967248  ;;  %v44_v0 = vld [vmem:[#allocation2] sm:$0xff]  ;;  %v45_v1 = vld [vmem:[#allocation2 + $0x8] sm:$0xff]  ;;  %s301_s1 = smov [#allocation7]   ;;  %s175_s25 = sshll.u32 %s334_s2, 4  ;;  %s176_s25 = int_to_ptr.hbm [resolvable:$true] %s175_s25 }
   0xd   :  { %v196_v2 = vld [vmem:[#allocation5] ss:$0 sm:$0xff]  ;;  %v85_v4 = vld [vmem:[#allocation2 + $0x18] sm:$0xff]  ;;  %v197_v5 = vld [vmem:[#allocation5 + $0x1] ss:$0 sm:$0xff]  ;;  %s173_s22 = sshll.u32 %s301_s1, 4  ;;  %s174_s22 = int_to_ptr.vmem [resolvable:$true] %s173_s22 }
   0xe   :  { %v84_v3 = vld [vmem:[#allocation2 + $0x10] sm:$0xff]  ;;  %v50_v6 = vadd.f32 %v196_v2, %v44_v0  ;;  %v51_v7 = vadd.f32 %v196_v2, %v45_v1  ;;  %v92_v10 = vadd.f32 %v197_v5, %v85_v4  ;;  %v125_v11 = vld [vmem:[#allocation2 + $0x20] sm:$0xff]  ;;  %v126_v12 = vld [vmem:[#allocation2 + $0x28] sm:$0xff] }
   0xf   :  { %v198_v8 = vld [vmem:[#allocation5 + $0x2] ss:$0 sm:$0xff]  ;;  %v91_v9 = vadd.f32 %v197_v5, %v84_v3 }
  0x10   :  { %vm52_vm0 = vcmp.gt.f32.partialorder %v50_v6, 0.0  ;;  %vm53_vm1 = vcmp.gt.f32.partialorder %v51_v7, 0.0  ;;  %v54_v13 = vmul.f32 0.01, %v50_v6  ;;  %v55_v14 = vmul.f32 0.01, %v51_v7 }
  0x11   :  { %vm93_vm2 = vcmp.gt.f32.partialorder %v91_v9, 0.0  ;;  %vm94_vm3 = vcmp.gt.f32.partialorder %v92_v10, 0.0  ;;  %v95_v15 = vmul.f32 0.01, %v91_v9  ;;  %v96_v16 = vmul.f32 0.01, %v92_v10 }
  0x12   :  { %v56_v17 = vsel %vm52_vm0, %v50_v6, %v54_v13  ;;  %v57_v18 = vsel %vm53_vm1, %v51_v7, %v55_v14  ;;  %v132_v19 = vadd.f32 %v198_v8, %v125_v11  ;;  %v133_v20 = vadd.f32 %v198_v8, %v126_v12 }
  0x13   :  { %v58_v21 = vmax.f32 %v56_v17, %v57_v18  ;;  %v97_v22 = vsel %vm93_vm2, %v91_v9, %v95_v15  ;;  %v98_v23 = vsel %vm94_vm3, %v92_v10, %v96_v16 }
  0x14   :  { %v99_v24 = vmax.f32 %v97_v22, %v98_v23  ;;  %vm134_vm4 = vcmp.gt.f32.partialorder %v132_v19, 0.0  ;;  %vm135_vm5 = vcmp.gt.f32.partialorder %v133_v20, 0.0  ;;  %v136_v25 = vmul.f32 0.01, %v132_v19 }
  0x15   :  { %v59_v26 = vrot.slane %v58_v21, 4  ;;  %v137_v27 = vmul.f32 0.01, %v133_v20 }
  0x16   :  { %v100_v28 = vrot.slane %v99_v24, 4  ;;  %v138_v29 = vsel %vm134_vm4, %v132_v19, %v136_v25 }
  0x17   :  { %v60_v30 = vmax.f32 %v58_v21, %v59_v26  ;;  %v139_v31 = vsel %vm135_vm5, %v133_v20, %v137_v27 }
  0x18   :  { %v101_v32 = vmax.f32 %v99_v24, %v100_v28  ;;  %v140_v33 = vmax.f32 %v138_v29, %v139_v31 }
  0x19   :  { %v61_v34 = vrot.slane %v60_v30, 2 }
  0x1a   :  { %v102_v35 = vrot.slane %v101_v32, 2  ;;  %v141_v36 = vrot.slane %v140_v33, 4 }
  0x1b   :  { %v62_v37 = vmax.f32 %v60_v30, %v61_v34 }
  0x1c   :  { %v103_v38 = vmax.f32 %v101_v32, %v102_v35  ;;  %v142_v39 = vmax.f32 %v140_v33, %v141_v36 }
  0x1d   :  { %v63_v40 = vrot.slane %v62_v37, 1 }
  0x1e   :  { %v104_v41 = vrot.slane %v103_v38, 1  ;;  %v143_v42 = vrot.slane %v142_v39, 2 }
  0x1f   :  { %v64_v43 = vmax.f32 %v62_v37, %v63_v40 }
  0x20   :  { %v105_v44 = vmax.f32 %v103_v38, %v104_v41  ;;  %v144_v45 = vmax.f32 %v142_v39, %v143_v42 }
  0x21   :  { %v65_v46 = vsub.f32 %v56_v17, %v64_v43  ;;  %v66_v47 = vsub.f32 %v57_v18, %v64_v43 }
  0x22   :  { %v106_v48 = vsub.f32 %v97_v22, %v105_v44  ;;  %v107_v49 = vsub.f32 %v98_v23, %v105_v44  ;;  %v145_v50 = vrot.slane %v144_v45, 1 }
  0x23   :  { %v67_v51 = vmul.f32 1.442695, %v65_v46  ;;  %v69_v52 = vmul.f32 1.442695, %v66_v47 }
  0x24   :  { %v108_v53 = vmul.f32 1.442695, %v106_v48  ;;  %v110_v54 = vmul.f32 1.442695, %v107_v49  ;;  %v146_v55 = vmax.f32 %v144_v45, %v145_v50 }
  0x25   :  { %199 = vpow2.f32 %v67_v51 }
  0x26   :  { %201 = vpow2.f32 %v69_v52  ;;  %v147_v56 = vsub.f32 %v138_v29, %v146_v55  ;;  %v148_v57 = vsub.f32 %v139_v31, %v146_v55 }
  0x27   :  { %203 = vpow2.f32 %v108_v53 }
  0x28   :  { %205 = vpow2.f32 %v110_v54  ;;  %v149_v58 = vmul.f32 1.442695, %v147_v56  ;;  %v151_v59 = vmul.f32 1.442695, %v148_v57 }
  0x2a   :  { %207 = vpow2.f32 %v149_v58 }
  0x2b   :  { %v200_v60 = vpop.eup %199  ;;  %209 = vpow2.f32 %v151_v59 }
  0x2c   :  { %v202_v61 = vpop.eup %201 }
  0x2d   :  { %v204_v62 = vpop.eup %203  ;;  %v71_v63 = vadd.f32 %v202_v61, %v200_v60 }
  0x2e   :  { %v206_v0 = vpop.eup %205 }
  0x2f   :  { %v72_v1 = vrot.slane %v71_v63, 4  ;;  %v112_v2 = vadd.f32 %v206_v0, %v204_v62 }
  0x30   :  { %v208_v3 = vpop.eup %207 }
  0x31   :  { %v210_v4 = vpop.eup %209  ;;  %v73_v5 = vadd.f32 %v72_v1, %v71_v63  ;;  %v113_v6 = vrot.slane %v112_v2, 4 }
  0x32   :  { %v153_v7 = vadd.f32 %v210_v4, %v208_v3 }
  0x33   :  { %v74_v8 = vrot.slane %v73_v5, 2  ;;  %v114_v9 = vadd.f32 %v113_v6, %v112_v2 }
  0x34   :  { %v154_v10 = vrot.slane %v153_v7, 4 }
  0x35   :  { %v75_v11 = vadd.f32 %v74_v8, %v73_v5  ;;  %v115_v12 = vrot.slane %v114_v9, 2 }
  0x36   :  { %v155_v13 = vadd.f32 %v154_v10, %v153_v7 }
  0x37   :  { %v76_v14 = vrot.slane %v75_v11, 1  ;;  %v116_v15 = vadd.f32 %v115_v12, %v114_v9 }
  0x38   :  { %v156_v16 = vrot.slane %v155_v13, 2 }
  0x39   :  { %v77_v17 = vadd.f32 %v76_v14, %v75_v11  ;;  %v117_v18 = vrot.slane %v116_v15, 1 }
  0x3a   :  { %v157_v19 = vadd.f32 %v156_v16, %v155_v13 }
  0x3b   :  { %211 = vrcp.f32 %v77_v17  ;;  %v118_v20 = vadd.f32 %v117_v18, %v116_v15 }
  0x3c   :  { %v158_v21 = vrot.slane %v157_v19, 1 }
  0x3d   :  { %213 = vrcp.f32 %v118_v20 }
  0x3e   :  { %v159_v22 = vadd.f32 %v158_v21, %v157_v19 }
  0x40   :  { %215 = vrcp.f32 %v159_v22 }
  0x41   :  { %v212_v23 = vpop.eup %211 }
  0x42   :  { %v79_v24 = vmul.f32 %v212_v23, %v200_v60  ;;  %v80_v25 = vmul.f32 %v212_v23, %v202_v61 }
  0x43   :  { %v214_v26 = vpop.eup %213 }
  0x44   :  { %v120_v27 = vmul.f32 %v214_v26, %v204_v62  ;;  %v121_v28 = vmul.f32 %v214_v26, %v206_v0 }
  0x46   :  { %v216_v29 = vpop.eup %215  ;;  %v122_v30 = vadd.f32 %v120_v27, %v79_v24  ;;  %v123_v31 = vadd.f32 %v121_v28, %v80_v25 }
  0x47   :  { %v161_v32 = vmul.f32 %v216_v29, %v208_v3  ;;  %v162_v33 = vmul.f32 %v216_v29, %v210_v4 }
  0x49   :  { %v163_v34 = vadd.f32 %v161_v32, %v122_v30  ;;  %v164_v35 = vadd.f32 %v162_v33, %v123_v31 }
  0x4b   :  { %v165_v36 = vmul.f32 0.33333334, %v163_v34  ;;  %v166_v37 = vmul.f32 0.33333334, %v164_v35 }
  0x4d   :  { %167 = vst [vmem:[#allocation7] sm:$0xff] %v165_v36 }
  0x4e   :  { %168 = vst [vmem:[#allocation7 + $0x8] sm:$0xff] %v166_v37 }
  0x4f   :  { %181 = dma.vmem_to_hbm [thread:$0]  %s174_s22, 256, %s176_s25, [#allocation4], %s296_s17, %s296_s17, %s297_s18  }
  0x50   :  { %293 = dma.done.wait [#allocation4], 256  }
  0x51   :  { %294 = vsyncadd [#allocation4], 4294967040 }
  0x52   :  { %186 = vsyncpa [#allocation3], 1 }
  0x53   :  { %187 = vsyncpa [#allocation6], 1 }
  0x54   :  { %188 = vsyncpa [#allocation4], 1 }

</bundles_post_ra>
